<compile_context>
chip_gen: v7x
topology: tpu7x:2x2x1
jax: 0.10.0
libtpu: 0.0.40
codegen_flags: <defaults>
</compile_context>

<pallas_src>
import functools

import jax
import jax.numpy as jnp
from jax.experimental import pallas as pl
from jax.experimental.pallas import tpu as pltpu

# ---------------------------------------------------------------------------
# Model hyper-parameters (small, consistent with the module's __init__)
# ---------------------------------------------------------------------------
BATCH = 8
INPUT_DIM = 32
OUTPUT_DIM = 16
HIDDEN_DIM = 64        # declared in __init__ but never used by forward()
NUM_HEADS = 4          # with seq_len==1 the result is independent of num_heads
NUM_LAYERS = 2
LN_EPS = 1e-5
L2_EPS = 1e-12         # F.normalize default eps
LANE = 128             # pad final output width to a full lane group


# ---------------------------------------------------------------------------
# Pallas kernel: whole forward pass (fused matmuls + layernorms + L2 norm)
# ---------------------------------------------------------------------------
def _attn_head_kernel(
    x_ref,       # (B, D)
    w_ref,       # (L, D, D)    fused per-layer weight  W_l = wv_l @ wo_l
    rows_ref,    # (L, 3, D)    rows: [c_l, gamma_l, beta_l]
    fin_ref,     # (D+3, DoP)   rows 0..D-1: wp (lane-padded), D: bp, D+1: gp, D+2: bbp
    out_ref,     # (B, DoP)     lane-dense padded output
    *, num_layers, d, do,
):
    x = x_ref[...].astype(jnp.float32)                        # (B, D)

    for l in range(num_layers):                               # static, tiny trip count
        w = w_ref[l]                                          # (D, D)
        rows = rows_ref[l]                                    # (3, D)
        c = rows[0:1, :]                                      # fused bias
        gamma = rows[1:2, :]
        beta = rows[2:3, :]

        # single-token MHA == out_proj(v_proj(x)); fused offline into one matmul
        attn_out = jnp.dot(x, w, preferred_element_type=jnp.float32) + c

        # residual + LayerNorm over feature dim (two-pass mean/var, f32)
        y = x + attn_out
        mean = jnp.mean(y, axis=-1, keepdims=True)
        var = jnp.mean(jnp.square(y - mean), axis=-1, keepdims=True)
        x = (y - mean) * jax.lax.rsqrt(var + LN_EPS) * gamma + beta

    # final_proj: Linear -> LayerNorm, computed at lane-padded width DoP.
    fin = fin_ref[...]                                        # (D+3, DoP)
    wp = fin[0:d, :]                                          # (D, DoP), pad cols = 0
    bp = fin[d:d + 1, :]                                      # (1, DoP), pad cols = 0
    gp = fin[d + 1:d + 2, :]
    bbp = fin[d + 2:d + 3, :]

    p = jnp.dot(x, wp, preferred_element_type=jnp.float32) + bp   # pad cols stay 0
    lane_idx = jax.lax.broadcasted_iota(jnp.int32, p.shape, 1)
    mask = (lane_idx < do).astype(jnp.float32)

    inv_do = jnp.float32(1.0 / do)
    mean = jnp.sum(p, axis=-1, keepdims=True) * inv_do            # pads are zero
    centered = (p - mean) * mask
    var = jnp.sum(centered * centered, axis=-1, keepdims=True) * inv_do
    pn = centered * jax.lax.rsqrt(var + LN_EPS) * gp + bbp        # pad cols -> 0

    # F.normalize(output, dim=-1): x / max(||x||_2, eps); pads contribute 0
    nrm = jnp.sqrt(jnp.sum(pn * pn, axis=-1, keepdims=True))
    out_ref[...] = (pn / jnp.maximum(nrm, L2_EPS)).astype(out_ref.dtype)


# ---------------------------------------------------------------------------
# Host-side param prep: algebraic fusion + packing into 3 slabs (done once)
# ---------------------------------------------------------------------------
def prepare_params(params):
    wv, wo = params["wv"], params["wo"]                      # (L, D, D)
    bv, bo = params["bv"], params["bo"]                      # (L, D)

    # Fuse v_proj followed by out_proj into one affine map (exact up to f32 rounding).
    w_fused = jnp.einsum("lij,ljk->lik", wv, wo)             # (L, D, D)
    c = jnp.einsum("lj,ljk->lk", bv, wo) + bo                # (L, D)

    rows = jnp.stack([c, params["ln_g"], params["ln_b"]], axis=1)   # (L, 3, D)

    D, Do = params["wp"].shape
    DoP = max(LANE, pl.cdiv(Do, LANE) * LANE)

    wp_pad = jnp.zeros((D, DoP), jnp.float32).at[:, :Do].set(params["wp"])

    def pad_row(r):                                          # (1, Do) -> (1, DoP)
        return jnp.zeros((1, DoP), jnp.float32).at[:, :Do].set(r)

    fin = jnp.concatenate(
        [wp_pad, pad_row(params["bp"]), pad_row(params["lnp_g"]), pad_row(params["lnp_b"])],
        axis=0,
    )                                                        # (D+3, DoP)

    return {"w_fused": w_fused, "rows": rows, "fin": fin, "D": D, "Do": Do, "DoP": DoP}


def attention_projection_head(x, prepared):
    """One gridless pallas_call; all operands resident in VMEM (footprint < 100 KB)."""
    B, D = x.shape
    Do, DoP = prepared["Do"], prepared["DoP"]
    L = prepared["w_fused"].shape[0]

    vmem = pl.BlockSpec(memory_space=pltpu.MemorySpace.VMEM)
    kernel = functools.partial(_attn_head_kernel, num_layers=L, d=D, do=Do)

    out_padded = pl.pallas_call(
        kernel,
        out_shape=jax.ShapeDtypeStruct((B, DoP), jnp.float32),
        in_specs=[vmem] * 4,
        out_specs=vmem,
    )(x, prepared["w_fused"], prepared["rows"], prepared["fin"])

    return out_padded[:, :Do]


# ---------------------------------------------------------------------------
# Pure-JAX reference (unfused module semantics, for correctness check)
# ---------------------------------------------------------------------------
def reference_forward(x, params):
    x = x.astype(jnp.float32)
    for l in range(NUM_LAYERS):
        v = x @ params["wv"][l] + params["bv"][l]
        attn_out = v @ params["wo"][l] + params["bo"][l]
        y = x + attn_out
        mean = jnp.mean(y, -1, keepdims=True)
        var = jnp.mean((y - mean) ** 2, -1, keepdims=True)
        x = (y - mean) * jax.lax.rsqrt(var + LN_EPS) * params["ln_g"][l] + params["ln_b"][l]
    p = x @ params["wp"] + params["bp"][0]
    mean = jnp.mean(p, -1, keepdims=True)
    var = jnp.mean((p - mean) ** 2, -1, keepdims=True)
    p = (p - mean) * jax.lax.rsqrt(var + LN_EPS) * params["lnp_g"][0] + params["lnp_b"][0]
    nrm = jnp.sqrt(jnp.sum(p * p, -1, keepdims=True))
    return p / jnp.maximum(nrm, L2_EPS)


# ---------------------------------------------------------------------------
# Deterministic parameter init (synthetic; shapes follow the module __init__)
# ---------------------------------------------------------------------------
def init_params(key, input_dim, output_dim, num_layers):
    ks = jax.random.split(key, 8)
    scale = 1.0 / jnp.sqrt(jnp.float32(input_dim))
    return {
        # value-projection + out-projection per attention layer (pre-transposed: (in, out))
        "wv": jax.random.normal(ks[0], (num_layers, input_dim, input_dim), jnp.float32) * scale,
        "bv": jax.random.normal(ks[1], (num_layers, input_dim), jnp.float32) * 0.01,
        "wo": jax.random.normal(ks[2], (num_layers, input_dim, input_dim), jnp.float32) * scale,
        "bo": jax.random.normal(ks[3], (num_layers, input_dim), jnp.float32) * 0.01,
        # per-layer LayerNorm affine
        "ln_g": jnp.ones((num_layers, input_dim), jnp.float32),
        "ln_b": jnp.zeros((num_layers, input_dim), jnp.float32),
        # final projection + LayerNorm
        "wp": jax.random.normal(ks[4], (input_dim, output_dim), jnp.float32) * scale,
        "bp": jax.random.normal(ks[5], (1, output_dim), jnp.float32) * 0.01,
        "lnp_g": jnp.ones((1, output_dim), jnp.float32),
        "lnp_b": jnp.zeros((1, output_dim), jnp.float32),
    }


if __name__ == "__main__":
    key = jax.random.PRNGKey(0)
    k_x, k_p = jax.random.split(key)

    x = jax.random.normal(k_x, (BATCH, INPUT_DIM), jnp.float32)
    params = init_params(k_p, INPUT_DIM, OUTPUT_DIM, NUM_LAYERS)

    prepared = prepare_params(params)           # fusion + packing done once, outside the kernel
    out = attention_projection_head(x, prepared)
    out = jax.block_until_ready(out)

    ref = reference_forward(x, params)
    assert out.shape == (BATCH, OUTPUT_DIM)
    # Offline fusion W_l = wv_l @ wo_l changes f32 summation order only; allow a bit of slack.
    assert jnp.allclose(out, ref, atol=1e-4, rtol=1e-4), "mismatch vs JAX reference"

    print("KERNEL_OK")
</pallas_src>

<mosaic_0001>
module attributes {stable_mosaic.version = 11 : i64} {
  func.func @_attn_head_kernel(%arg0: memref<8x32xf32, #tpu.memory_space<vmem>>, %arg1: memref<2x32x32xf32, #tpu.memory_space<vmem>>, %arg2: memref<2x3x32xf32, #tpu.memory_space<vmem>>, %arg3: memref<35x128xf32, #tpu.memory_space<vmem>>, %arg4: memref<8x128xf32, #tpu.memory_space<vmem>>) attributes {dimension_semantics = [], scalar_prefetch = 0 : i64, scratch_operands = 0 : i64, tpu.core_type = #tpu.core_type<tc>} {
    %c0 = arith.constant 0 : index
    %c0_0 = arith.constant 0 : index
    %0 = vector.load %arg0[%c0, %c0_0] : memref<8x32xf32, #tpu.memory_space<vmem>>, vector<8x32xf32>
    %c0_1 = arith.constant 0 : index
    %c0_2 = arith.constant 0 : index
    %c0_3 = arith.constant 0 : index
    %1 = vector.load %arg1[%c0_1, %c0_2, %c0_3] : memref<2x32x32xf32, #tpu.memory_space<vmem>>, vector<1x32x32xf32>
    %2 = vector.shape_cast %1 : vector<1x32x32xf32> to vector<32x32xf32>
    %c0_4 = arith.constant 0 : index
    %c0_5 = arith.constant 0 : index
    %c0_6 = arith.constant 0 : index
    %3 = vector.load %arg2[%c0_4, %c0_5, %c0_6] : memref<2x3x32xf32, #tpu.memory_space<vmem>>, vector<1x3x32xf32>
    %4 = vector.shape_cast %3 : vector<1x3x32xf32> to vector<3x32xf32>
    %5 = vector.extract_strided_slice %4 {offsets = [0, 0], sizes = [1, 32], strides = [1, 1]} : vector<3x32xf32> to vector<1x32xf32>
    %6 = vector.extract_strided_slice %4 {offsets = [1, 0], sizes = [1, 32], strides = [1, 1]} : vector<3x32xf32> to vector<1x32xf32>
    %7 = vector.extract_strided_slice %4 {offsets = [2, 0], sizes = [1, 32], strides = [1, 1]} : vector<3x32xf32> to vector<1x32xf32>
    %cst = arith.constant dense<0.000000e+00> : vector<8x32xf32>
    %8 = tpu.matmul %0, %2, %cst {dimension_numbers = #tpu.dot_dimension_numbers<[1], [0], [0], [1], [0, 0, 1, 1], [], []>} : vector<8x32xf32>, vector<32x32xf32>, vector<8x32xf32> -> vector<8x32xf32>
    %9 = vector.broadcast %5 : vector<1x32xf32> to vector<8x32xf32>
    %10 = arith.addf %8, %9 : vector<8x32xf32>
    %11 = arith.addf %0, %10 : vector<8x32xf32>
    %cst_7 = arith.constant dense<0.000000e+00> : vector<8xf32>
    %12 = vector.multi_reduction <add>, %11, %cst_7 [1] : vector<8x32xf32> to vector<8xf32>
    %13 = vector.shape_cast %12 : vector<8xf32> to vector<8x1xf32>
    %cst_8 = arith.constant 3.200000e+01 : f32
    %14 = vector.broadcast %cst_8 : f32 to vector<8x1xf32>
    %15 = arith.divf %13, %14 : vector<8x1xf32>
    %16 = vector.broadcast %15 : vector<8x1xf32> to vector<8x32xf32>
    %17 = arith.subf %11, %16 : vector<8x32xf32>
    %18 = arith.mulf %17, %17 : vector<8x32xf32>
    %cst_9 = arith.constant dense<0.000000e+00> : vector<8xf32>
    %19 = vector.multi_reduction <add>, %18, %cst_9 [1] : vector<8x32xf32> to vector<8xf32>
    %20 = vector.shape_cast %19 : vector<8xf32> to vector<8x1xf32>
    %cst_10 = arith.constant 3.200000e+01 : f32
    %21 = vector.broadcast %cst_10 : f32 to vector<8x1xf32>
    %22 = arith.divf %20, %21 : vector<8x1xf32>
    %23 = vector.broadcast %15 : vector<8x1xf32> to vector<8x32xf32>
    %24 = arith.subf %11, %23 : vector<8x32xf32>
    %cst_11 = arith.constant 9.99999974E-6 : f32
    %25 = vector.broadcast %cst_11 : f32 to vector<8x1xf32>
    %26 = arith.addf %22, %25 : vector<8x1xf32>
    %27 = math.rsqrt %26 : vector<8x1xf32>
    %28 = vector.broadcast %27 : vector<8x1xf32> to vector<8x32xf32>
    %29 = arith.mulf %24, %28 : vector<8x32xf32>
    %30 = vector.broadcast %6 : vector<1x32xf32> to vector<8x32xf32>
    %31 = arith.mulf %29, %30 : vector<8x32xf32>
    %32 = vector.broadcast %7 : vector<1x32xf32> to vector<8x32xf32>
    %33 = arith.addf %31, %32 : vector<8x32xf32>
    %c1 = arith.constant 1 : index
    %c0_12 = arith.constant 0 : index
    %c0_13 = arith.constant 0 : index
    %34 = vector.load %arg1[%c1, %c0_12, %c0_13] : memref<2x32x32xf32, #tpu.memory_space<vmem>>, vector<1x32x32xf32>
    %35 = vector.shape_cast %34 : vector<1x32x32xf32> to vector<32x32xf32>
    %c1_14 = arith.constant 1 : index
    %c0_15 = arith.constant 0 : index
    %c0_16 = arith.constant 0 : index
    %36 = vector.load %arg2[%c1_14, %c0_15, %c0_16] : memref<2x3x32xf32, #tpu.memory_space<vmem>>, vector<1x3x32xf32>
    %37 = vector.shape_cast %36 : vector<1x3x32xf32> to vector<3x32xf32>
    %38 = vector.extract_strided_slice %37 {offsets = [0, 0], sizes = [1, 32], strides = [1, 1]} : vector<3x32xf32> to vector<1x32xf32>
    %39 = vector.extract_strided_slice %37 {offsets = [1, 0], sizes = [1, 32], strides = [1, 1]} : vector<3x32xf32> to vector<1x32xf32>
    %40 = vector.extract_strided_slice %37 {offsets = [2, 0], sizes = [1, 32], strides = [1, 1]} : vector<3x32xf32> to vector<1x32xf32>
    %cst_17 = arith.constant dense<0.000000e+00> : vector<8x32xf32>
    %41 = tpu.matmul %33, %35, %cst_17 {dimension_numbers = #tpu.dot_dimension_numbers<[1], [0], [0], [1], [0, 0, 1, 1], [], []>} : vector<8x32xf32>, vector<32x32xf32>, vector<8x32xf32> -> vector<8x32xf32>
    %42 = vector.broadcast %38 : vector<1x32xf32> to vector<8x32xf32>
    %43 = arith.addf %41, %42 : vector<8x32xf32>
    %44 = arith.addf %33, %43 : vector<8x32xf32>
    %cst_18 = arith.constant dense<0.000000e+00> : vector<8xf32>
    %45 = vector.multi_reduction <add>, %44, %cst_18 [1] : vector<8x32xf32> to vector<8xf32>
    %46 = vector.shape_cast %45 : vector<8xf32> to vector<8x1xf32>
    %cst_19 = arith.constant 3.200000e+01 : f32
    %47 = vector.broadcast %cst_19 : f32 to vector<8x1xf32>
    %48 = arith.divf %46, %47 : vector<8x1xf32>
    %49 = vector.broadcast %48 : vector<8x1xf32> to vector<8x32xf32>
    %50 = arith.subf %44, %49 : vector<8x32xf32>
    %51 = arith.mulf %50, %50 : vector<8x32xf32>
    %cst_20 = arith.constant dense<0.000000e+00> : vector<8xf32>
    %52 = vector.multi_reduction <add>, %51, %cst_20 [1] : vector<8x32xf32> to vector<8xf32>
    %53 = vector.shape_cast %52 : vector<8xf32> to vector<8x1xf32>
    %cst_21 = arith.constant 3.200000e+01 : f32
    %54 = vector.broadcast %cst_21 : f32 to vector<8x1xf32>
    %55 = arith.divf %53, %54 : vector<8x1xf32>
    %56 = vector.broadcast %48 : vector<8x1xf32> to vector<8x32xf32>
    %57 = arith.subf %44, %56 : vector<8x32xf32>
    %cst_22 = arith.constant 9.99999974E-6 : f32
    %58 = vector.broadcast %cst_22 : f32 to vector<8x1xf32>
    %59 = arith.addf %55, %58 : vector<8x1xf32>
    %60 = math.rsqrt %59 : vector<8x1xf32>
    %61 = vector.broadcast %60 : vector<8x1xf32> to vector<8x32xf32>
    %62 = arith.mulf %57, %61 : vector<8x32xf32>
    %63 = vector.broadcast %39 : vector<1x32xf32> to vector<8x32xf32>
    %64 = arith.mulf %62, %63 : vector<8x32xf32>
    %65 = vector.broadcast %40 : vector<1x32xf32> to vector<8x32xf32>
    %66 = arith.addf %64, %65 : vector<8x32xf32>
    %c0_23 = arith.constant 0 : index
    %c0_24 = arith.constant 0 : index
    %67 = vector.load %arg3[%c0_23, %c0_24] : memref<35x128xf32, #tpu.memory_space<vmem>>, vector<35x128xf32>
    %68 = vector.extract_strided_slice %67 {offsets = [0, 0], sizes = [32, 128], strides = [1, 1]} : vector<35x128xf32> to vector<32x128xf32>
    %69 = vector.extract_strided_slice %67 {offsets = [32, 0], sizes = [1, 128], strides = [1, 1]} : vector<35x128xf32> to vector<1x128xf32>
    %70 = vector.extract_strided_slice %67 {offsets = [33, 0], sizes = [1, 128], strides = [1, 1]} : vector<35x128xf32> to vector<1x128xf32>
    %71 = vector.extract_strided_slice %67 {offsets = [34, 0], sizes = [1, 128], strides = [1, 1]} : vector<35x128xf32> to vector<1x128xf32>
    %cst_25 = arith.constant dense<0.000000e+00> : vector<8x128xf32>
    %72 = tpu.matmul %66, %68, %cst_25 {dimension_numbers = #tpu.dot_dimension_numbers<[1], [0], [0], [1], [0, 0, 1, 1], [], []>} : vector<8x32xf32>, vector<32x128xf32>, vector<8x128xf32> -> vector<8x128xf32>
    %73 = vector.broadcast %69 : vector<1x128xf32> to vector<8x128xf32>
    %74 = arith.addf %72, %73 : vector<8x128xf32>
    %75 = tpu.iota {dimensions = array<i32: 1>} : vector<8x128xi32>
    %c16_i32 = arith.constant 16 : i32
    %76 = vector.broadcast %c16_i32 : i32 to vector<8x128xi32>
    %77 = arith.cmpi slt, %75, %76 : vector<8x128xi32>
    %78 = arith.extui %77 : vector<8x128xi1> to vector<8x128xi32>
    %79 = arith.sitofp %78 : vector<8x128xi32> to vector<8x128xf32>
    %cst_26 = arith.constant dense<0.000000e+00> : vector<8xf32>
    %80 = vector.multi_reduction <add>, %74, %cst_26 [1] : vector<8x128xf32> to vector<8xf32>
    %81 = vector.shape_cast %80 : vector<8xf32> to vector<8x1xf32>
    %cst_27 = arith.constant 6.250000e-02 : f32
    %82 = vector.broadcast %cst_27 : f32 to vector<8x1xf32>
    %83 = arith.mulf %81, %82 : vector<8x1xf32>
    %84 = vector.broadcast %83 : vector<8x1xf32> to vector<8x128xf32>
    %85 = arith.subf %74, %84 : vector<8x128xf32>
    %86 = arith.mulf %85, %79 : vector<8x128xf32>
    %87 = arith.mulf %86, %86 : vector<8x128xf32>
    %cst_28 = arith.constant dense<0.000000e+00> : vector<8xf32>
    %88 = vector.multi_reduction <add>, %87, %cst_28 [1] : vector<8x128xf32> to vector<8xf32>
    %89 = vector.shape_cast %88 : vector<8xf32> to vector<8x1xf32>
    %cst_29 = arith.constant 6.250000e-02 : f32
    %90 = vector.broadcast %cst_29 : f32 to vector<8x1xf32>
    %91 = arith.mulf %89, %90 : vector<8x1xf32>
    %cst_30 = arith.constant 9.99999974E-6 : f32
    %92 = vector.broadcast %cst_30 : f32 to vector<8x1xf32>
    %93 = arith.addf %91, %92 : vector<8x1xf32>
    %94 = math.rsqrt %93 : vector<8x1xf32>
    %95 = vector.broadcast %94 : vector<8x1xf32> to vector<8x128xf32>
    %96 = arith.mulf %86, %95 : vector<8x128xf32>
    %97 = vector.broadcast %70 : vector<1x128xf32> to vector<8x128xf32>
    %98 = arith.mulf %96, %97 : vector<8x128xf32>
    %99 = vector.broadcast %71 : vector<1x128xf32> to vector<8x128xf32>
    %100 = arith.addf %98, %99 : vector<8x128xf32>
    %101 = arith.mulf %100, %100 : vector<8x128xf32>
    %cst_31 = arith.constant dense<0.000000e+00> : vector<8xf32>
    %102 = vector.multi_reduction <add>, %101, %cst_31 [1] : vector<8x128xf32> to vector<8xf32>
    %103 = vector.shape_cast %102 : vector<8xf32> to vector<8x1xf32>
    %104 = math.sqrt %103 : vector<8x1xf32>
    %cst_32 = arith.constant 9.99999996E-13 : f32
    %105 = vector.broadcast %cst_32 : f32 to vector<8x1xf32>
    %106 = arith.maximumf %104, %105 : vector<8x1xf32>
    %107 = vector.broadcast %106 : vector<8x1xf32> to vector<8x128xf32>
    %108 = arith.divf %100, %107 : vector<8x128xf32>
    %c0_33 = arith.constant 0 : index
    %c0_34 = arith.constant 0 : index
    %109 = vector.load %arg4[%c0_33, %c0_34] : memref<8x128xf32, #tpu.memory_space<vmem>>, vector<8x128xf32>
    tpu.vector_store %arg4[%c0_33, %c0_34], %108 {strides = array<i32>} : memref<8x128xf32, #tpu.memory_space<vmem>>, vector<8x128xf32>,
    return
  }
}

</mosaic_0001>

<bundles_post_ra>
// kernel: tpu_custom_call.1
= control target key start
LH: loop header
LB: loop body
LE: loop exit
PB: predicated region body
PF: predicated region fallthrough
CT: control target
= control target key end

     0   :  { %9 = vsyncpa [#allocation3], 0  ;;  %s678_s0 = inlined_call_operand.vmem [shape: f32[8,32], index: 0, kind: input, shape index: {}]   ;;  %s679_s1 = inlined_call_operand.hbm [shape: f32[2,32,32], index: 1, kind: input, shape index: {}]   ;;  %s680_s2 = inlined_call_operand.vmem [shape: f32[2,3,32], index: 2, kind: input, shape index: {}]   ;;  %s681_s3 = inlined_call_operand.hbm [shape: f32[35,128], index: 3, kind: input, shape index: {}]   ;;  %s682_s4 = inlined_call_operand.hbm [shape: f32[8,128], index: 4, kind: output, shape index: {}]  }
   0x1   :  { %10 = vsyncpa [#allocation6], 0 }
   0x2   :  { %11 = vsyncpa [#allocation4], 0  ;;  %s563_s15 = smov [#allocation2]   ;;  %s491_s19 = scalar_lea.hbm %s679_s1, 1024 }
   0x3   :  { %s19_s16 = sshll.u32 %s563_s15, 4  ;;  %p492_p0 = scmp.ne.s32.totalorder %s679_s1, %s491_s19  ;;  %s20_s16 = int_to_ptr.vmem [resolvable:$true] %s19_s16 }
   0x4   :  { %p495_p1 = scmp.lt.u32.totalorder %s491_s19, %s679_s1 }
   0x6   :  { %p497_p2 = pnand %p495_p1, %p492_p0 }
   0x8   :  { %500 = shalt.err (!%p497_p2)
}
   0x9   :  { %s501_s24 = scalar_lea.vmem %s20_s16, 1024  ;;  %p506_p4 = scmp.lt.s32.totalorder %s20_s16, %s20_s16 }
   0xa   :  { %p502_p3 = scmp.ne.s32.totalorder %s20_s16, %s501_s24  ;;  %p507_p5 = scmp.lt.s32.totalorder %s501_s24, %s501_s24 }
   0xc   :  { %p508_p6 = por %p507_p5, %p506_p4 }
   0xe   :  { %p509_p7 = pnand %p508_p6, %p502_p3 }
  0x10   :  { %512 = shalt.err (!%p509_p7)
}
  0x11   :  { %s564_s25 = smov 128   ;;  %s565_s26 = smov 8  }
  0x12   :  { %25 = dma.hbm_to_vmem [thread:$0]  %s679_s1, 1024, %s20_s16, [#allocation3], %s564_s25, %s564_s25, %s565_s26  }
  0x13   :  { %s566_s29 = smov [#allocation5]   ;;  %s513_s7 = scalar_lea.hbm %s681_s3, 640 }
  0x14   :  { %s33_s30 = sshll.u32 %s566_s29, 4  ;;  %p514_p8 = scmp.ne.s32.totalorder %s681_s3, %s513_s7  ;;  %s34_s30 = int_to_ptr.vmem [resolvable:$true] %s33_s30 }
  0x15   :  { %p517_p9 = scmp.lt.u32.totalorder %s513_s7, %s681_s3 }
  0x17   :  { %p519_p10 = pnand %p517_p9, %p514_p8 }
  0x19   :  { %522 = shalt.err (!%p519_p10)
}
  0x1a   :  { %s523_s12 = scalar_lea.vmem %s34_s30, 640  ;;  %p528_p12 = scmp.lt.s32.totalorder %s34_s30, %s34_s30 }
  0x1b   :  { %p524_p11 = scmp.ne.s32.totalorder %s34_s30, %s523_s12  ;;  %p529_p13 = scmp.lt.s32.totalorder %s523_s12, %s523_s12 }
  0x1d   :  { %p530_p0 = por %p529_p13, %p528_p12 }
  0x1f   :  { %p531_p1 = pnand %p530_p0, %p524_p11 }
  0x21   :  { %534 = shalt.err (!%p531_p1)
}
  0x22   :  { %39 = dma.hbm_to_vmem [thread:$0]  %s681_s3, 640, %s34_s30, [#allocation6], %s564_s25, %s564_s25, %s565_s26  }
  0x23   :  { %557 = dma.done.wait [#allocation3], 1024  }
  0x24   :  { %558 = vsyncadd [#allocation3], 4294966272 }
  0x25   :  { %559 = dma.done.wait [#allocation6], 640  }
  0x26   :  { %560 = vsyncadd [#allocation6], 4294966656  ;;  %v567_v0 = vmov 0.0|0.0   ;;  %vm568_vm0 = vmmov 0   ;;  %v569_v1 = vmov 0.0   ;;  %v47_v2 = vld [vmem:[#allocation2] sm:$0xff]  ;;  %v52_v9 = vlaneseq }
  0x27   :  { %455 = vmatprep.subr.bf16.mxu0 %v567_v0  ;;  %430 = vmatprep.mubr.msk.f32.mxu0 %vm568_vm0, %v569_v1  ;;  %v48_v3 = vld [vmem:[#allocation2 + $0x8] sm:$0xff]  ;;  %v49_v4 = vld [vmem:[#allocation2 + $0x10] sm:$0xff]  ;;  %v50_v6 = vld [vmem:[#allocation2 + $0x18] sm:$0xff]  ;;  %vm56_vm1 = vcmask 261120  }
  0x28   :  { %461 = vmatprep.subr.bf16.mxu1 %v567_v0  ;;  %441 = vmatprep.mubr.msk.f32.mxu1 %vm568_vm0, %v569_v1  ;;  %v456_v5 = vpack.c.bf16 %v48_v3, %v47_v2  ;;  %v459_v7 = vpack.c.bf16 %v50_v6, %v49_v4  ;;  %v46_v8 = vld [vmem:[%s678_s0] sm:$0xff]  ;;  %v53_v10 = vshrl.u32 %v52_v9, 7  ;;  %v157_v25 = vld [vmem:[#allocation2 + $0x28] sm:$0xff]  ;;  %v158_v26 = vld [vmem:[#allocation2 + $0x30] sm:$0xff] }
  0x29   :  { %v51_v12 = vld [vmem:[%s680_s2] sm:$0x7]  ;;  %v159_v28 = vld [vmem:[#allocation2 + $0x38] sm:$0xff]  ;;  %v403_v41 = vld [vmem:[%s680_s2 + $0x4] sm:$0x7]  ;;  %s570_s2 = smov [#allocation7]  }
  0x2a   :  { %457 = vmatpush3.bf16.msra.mxu0 %v456_v5  ;;  %v635_v11 = vsub.s32 0, %v53_v10  ;;  %v156_v24 = vld [vmem:[#allocation2 + $0x20] sm:$0xff]  ;;  %v465_v29 = vpack.c.bf16 %v159_v28, %v158_v26  ;;  %v644_v33 = vsub.s32 1, %v53_v10  ;;  %v646_v34 = vsub.s32 2, %v53_v10  ;;  %v264_v54 = vld [vmem:[#allocation5 + $0x8] sm:$0xff]  ;;  %v265_v56 = vld [vmem:[#allocation5 + $0x10] sm:$0xff] }
  0x2b   :  { %458 = vmatprep.subr.bf16.mxu0 %v567_v0  ;;  %v462_v27 = vpack.c.bf16 %v157_v25, %v156_v24  ;;  %v263_v53 = vld [vmem:[#allocation5] sm:$0xff]  ;;  %v266_v57 = vld [vmem:[#allocation5 + $0x18] sm:$0xff]  ;;  %s392_s18 = sshll.u32 %s570_s2, 4  ;;  %s393_s18 = int_to_ptr.vmem [resolvable:$true] %s392_s18 }
  0x2c   :  { %v55_v13 = vrot.slane %v51_v12, %v635_v11  ;;  %v148_v35 = vrot.slane %v51_v12, %v644_v33  ;;  %v153_v37 = vrot.slane %v51_v12, %v646_v34  ;;  %v165_v42 = vrot.slane %v403_v41, %v635_v11  ;;  %v267_v6 = vld [vmem:[#allocation5 + $0x20] sm:$0x7]  ;;  %s535_s19 = scalar_lea.vmem %s393_s18, 128  ;;  %p540_p3 = scmp.lt.s32.totalorder %s393_s18, %s393_s18 }
  0x2d   :  { %463 = vmatpush3.bf16.msra.mxu1 %v462_v27  ;;  %v468_v55 = vpack.c.bf16 %v264_v54, %v263_v53  ;;  %v471_v58 = vpack.c.bf16 %v266_v57, %v265_v56  ;;  %v256_v62 = vrot.slane %v403_v41, %v644_v33  ;;  %v261_v2 = vrot.slane %v403_v41, %v646_v34  ;;  %p536_p2 = scmp.ne.s32.totalorder %s393_s18, %s535_s19  ;;  %p541_p4 = scmp.lt.s32.totalorder %s535_s19, %s535_s19 }
  0x2e   :  { %460 = vmatpush3.bf16.msra.mxu0 %v459_v7  ;;  %464 = vmatprep.subr.bf16.mxu1 %v567_v0  ;;  %v346_v12 = vand.u32 127, %v52_v9  ;;  %v370_v24 = vrot.slane %v267_v6, %v646_v34 }
  0x2f   :  { %467 = vmatprep.subr.bf16.mxu0 %v567_v0  ;;  %p542_p5 = por %p541_p4, %p540_p3 }
  0x30   :  { %vm347_vm2 = vcmp.lt.s32.totalorder %v346_v12, 16 }
  0x31   :  { %431 = vmatmul.mubr.msk.f32.vlgmr.msra.gmra.mrb[0].mxu0 %vm56_vm1, %v46_v8  ;;  %466 = vmatpush3.bf16.msra.mxu1 %v465_v29  ;;  %p543_p6 = pnand %p542_p5, %p536_p2 }
  0x32   :  { %452 = vmatprep.mubr.msk.f32.mxu0 %vm568_vm0, %v569_v1  ;;  %469 = vmatpush3.bf16.msra.mxu0 %v468_v55 }
  0x33   :  { %470 = vmatprep.subr.bf16.mxu0 %v567_v0  ;;  %v271_v0 = vrot.slane %v267_v6, %v635_v11  ;;  %v365_v11 = vrot.slane %v267_v6, %v644_v33 }
  0x36   :  { %472 = vmatpush3.bf16.msra.mxu0 %v471_v58 }
 0x104   :  { %v126_v14 = vpop.f32.mrb[0].mxu0 }
 0x105   :  { %v127_v15 = vadd.f32 %v126_v14, %v55_v13  ;;  %v432_v16 = vpop.f32.mrb[1].mxu0 }
 0x107   :  { %v130_v17 = vadd.f32 %v127_v15, %v46_v8  ;;  %v406_v15 = vsel %vm347_vm2, 1.0, %v569_v1 }
 0x109   :  { %v131_v18 = vsel %vm56_vm1, %v130_v17, 0.0 }
 0x10a   :  { %132 = vadd.xlane.f32.xlu0 %v131_v18 }
 0x197   :  { %v133_v19 = vpop.xlane.xlu0 %132 }
 0x198   :  { %v135_v20 = vmul.f32 0.03125, %v133_v19 }
 0x19a   :  { %v136_v21 = vsub.f32 %v130_v17, %v135_v20 }
 0x19c   :  { %v137_v22 = vmul.f32 %v136_v21, %v136_v21 }
 0x19e   :  { %v138_v23 = vsel %vm56_vm1, %v137_v22, 0.0 }
 0x19f   :  { %139 = vadd.xlane.f32.xlu0 %v138_v23 }
 0x22c   :  { %v140_v30 = vpop.xlane.xlu0 %139 }
 0x22d   :  { %v141_v31 = vmul.f32 0.03125, %v140_v30 }
 0x22f   :  { %v142_v32 = vadd.f32 1e-05, %v141_v31 }
 0x231   :  { %481 = vrsqrt.f32 %v142_v32 }
 0x23b   :  { %v482_v36 = vpop.eup %481 }
 0x23c   :  { %v144_v38 = vmul.f32 %v482_v36, %v136_v21 }
 0x23e   :  { %v149_v39 = vmul.f32 %v148_v35, %v144_v38 }
 0x240   :  { %v154_v40 = vadd.f32 %v153_v37, %v149_v39 }
 0x242   :  { %442 = vmatmul.mubr.msk.f32.vlgmr.msra.gmra.mrb[0].mxu1 %vm56_vm1, %v154_v40 }
 0x315   :  { %v235_v43 = vpop.f32.mrb[0].mxu1 }
 0x316   :  { %v236_v44 = vadd.f32 %v235_v43, %v165_v42  ;;  %v443_v45 = vpop.f32.mrb[1].mxu1 }
 0x318   :  { %v239_v46 = vadd.f32 %v236_v44, %v154_v40 }
 0x31a   :  { %v240_v47 = vsel %vm56_vm1, %v239_v46, 0.0 }
 0x31b   :  { %241 = vadd.xlane.f32.xlu1 %v240_v47 }
 0x3a8   :  { %v242_v48 = vpop.xlane.xlu1 %241 }
 0x3a9   :  { %v243_v49 = vmul.f32 0.03125, %v242_v48 }
 0x3ab   :  { %v244_v50 = vsub.f32 %v239_v46, %v243_v49 }
 0x3ad   :  { %v245_v51 = vmul.f32 %v244_v50, %v244_v50 }
 0x3af   :  { %v246_v52 = vsel %vm56_vm1, %v245_v51, 0.0 }
 0x3b0   :  { %247 = vadd.xlane.f32.xlu1 %v246_v52 }
 0x43d   :  { %v248_v59 = vpop.xlane.xlu1 %247 }
 0x43e   :  { %v249_v60 = vmul.f32 0.03125, %v248_v59 }
 0x440   :  { %v250_v61 = vadd.f32 1e-05, %v249_v60 }
 0x442   :  { %483 = vrsqrt.f32 %v250_v61 }
 0x44c   :  { %v484_v63 = vpop.eup %483 }
 0x44d   :  { %v252_v3 = vmul.f32 %v484_v63, %v244_v50 }
 0x44f   :  { %v257_v4 = vmul.f32 %v256_v62, %v252_v3 }
 0x451   :  { %v262_v5 = vadd.f32 %v261_v2, %v257_v4 }
 0x453   :  { %453 = vmatmul.mubr.msk.f32.vlgmr.msra.gmra.mrb[2].mxu0 %vm56_vm1, %v262_v5 }
 0x526   :  { %v341_v7 = vpop.f32.mrb[2].mxu0 }
 0x527   :  { %v342_v8 = vadd.f32 %v341_v7, %v271_v0  ;;  %v454_v10 = vpop.f32.mrb[3].mxu0 }
 0x529   :  { %350 = vadd.xlane.f32.xlu0 %v342_v8 }
 0x5b6   :  { %v351_v13 = vpop.xlane.xlu0 %350 }
 0x5b7   :  { %v352_v14 = vmul.f32 0.0625, %v351_v13 }
 0x5b9   :  { %v353_v16 = vsub.f32 %v342_v8, %v352_v14 }
 0x5bb   :  { %v354_v17 = vmul.f32 %v406_v15, %v353_v16 }
 0x5bd   :  { %v355_v18 = vmul.f32 %v354_v17, %v354_v17 }
 0x5bf   :  { %356 = vadd.xlane.f32.xlu1 %v355_v18 }
 0x64c   :  { %v357_v19 = vpop.xlane.xlu1 %356 }
 0x64d   :  { %v358_v20 = vmul.f32 0.0625, %v357_v19 }
 0x64f   :  { %v359_v21 = vadd.f32 1e-05, %v358_v20 }
 0x651   :  { %485 = vrsqrt.f32 %v359_v21 }
 0x65b   :  { %v486_v22 = vpop.eup %485 }
 0x65c   :  { %v361_v23 = vmul.f32 %v486_v22, %v354_v17 }
 0x65e   :  { %v366_v9 = vmul.f32 %v365_v11, %v361_v23 }
 0x660   :  { %v371_v25 = vadd.f32 %v370_v24, %v366_v9 }
 0x662   :  { %v372_v26 = vmul.f32 %v371_v25, %v371_v25 }
 0x664   :  { %373 = vadd.xlane.f32.xlu0 %v372_v26 }
 0x6f1   :  { %v374_v27 = vpop.xlane.xlu0 %373 }
 0x6f2   :  { %487 = vrsqrt.f32 %v374_v27  ;;  %vm377_vm3 = vcmp.eq.f32.partialorder %v374_v27, inf  ;;  %v380_v29 = vand.u32 2147483648, %v374_v27  ;;  %vm379_vm4 = vcmp.eq.f32.partialorder %v374_v27, 0.0 }
 0x6fc   :  { %v488_v1 = vpop.eup %487 }
 0x6fd   :  { %v376_v28 = vmul.f32 %v488_v1, %v374_v27 }
 0x6ff   :  { %v378_v30 = vsel %vm377_vm3, %v374_v27, %v376_v28 }
 0x700   :  { %v381_v31 = vsel %vm379_vm4, %v380_v29, %v378_v30 }
 0x701   :  { %v382_v32 = vmax.f32 %v381_v31, 1e-12 }
 0x703   :  { %489 = vrcp.f32 %v382_v32 }
 0x70d   :  { %v490_v33 = vpop.eup %489 }
 0x70e   :  { %v384_v35 = vmul.f32 %v490_v33, %v371_v25 }
 0x710   :  { %385 = vst [vmem:[#allocation7] sm:$0xff] %v384_v35 }
 0x711   :  { %546 = shalt.err (!%p543_p6)
}
 0x712   :  { %s547_s22 = scalar_lea.hbm %s682_s4, 128 }
 0x713   :  { %p548_p7 = scmp.ne.s32.totalorder %s682_s4, %s547_s22  ;;  %p551_p8 = scmp.lt.u32.totalorder %s547_s22, %s682_s4 }
 0x715   :  { %p553_p9 = pnand %p551_p8, %p548_p7 }
 0x717   :  { %556 = shalt.err (!%p553_p9)
}
 0x718   :  { %395 = dma.vmem_to_hbm [thread:$0]  %s393_s18, 128, %s682_s4, [#allocation4]  }
 0x719   :  { %561 = dma.done.wait [#allocation4], 128  }
 0x71a   :  { %562 = vsyncadd [#allocation4], 4294967168 }
 0x71b   :  { %399 = vsyncpa [#allocation3], 1 }
 0x71c   :  { %400 = vsyncpa [#allocation6], 1 }
 0x71d   :  { %401 = vsyncpa [#allocation4], 1 }

</bundles_post_ra>
